<compile_context>
chip_gen: v7x
topology: tpu7x:2x2x1
jax: 0.10.0
libtpu: 0.0.40
codegen_flags: <defaults>
</compile_context>

<pallas_src>
import functools
import math

import jax
import jax.numpy as jnp
from jax import lax
from jax.experimental import pallas as pl
from jax.experimental.pallas import tpu as pltpu


# ----------------------------------------------------------------------------
# Pallas kernels
# ----------------------------------------------------------------------------
def gemm_kernel(*refs, relu, has_res, multi_k):
    """Tiled GEMM (bf16 in, f32 acc) + fused scale/bias [+ residual] [+ ReLU].

    Ref order: a, b, scale, bias, [residual], out, [acc scratch].
    """
    if multi_k:
        acc_ref = refs[-1]
        refs = refs[:-1]
    o_ref = refs[-1]
    a_ref, b_ref, s_ref, c_ref = refs[0], refs[1], refs[2], refs[3]
    r_ref = refs[4] if has_res else None

    def epilogue(acc):
        out = acc * s_ref[...] + c_ref[...]
        if has_res:
            out = out + r_ref[...].astype(jnp.float32)
        if relu:
            out = jnp.maximum(out, 0.0)
        return out.astype(o_ref.dtype)

    if multi_k:
        @pl.when(pl.program_id(2) == 0)
        def _init():
            acc_ref[...] = jnp.zeros_like(acc_ref)

        acc_ref[...] += jnp.dot(a_ref[...], b_ref[...],
                                preferred_element_type=jnp.float32)

        @pl.when(pl.program_id(2) == pl.num_programs(2) - 1)
        def _finalize():
            o_ref[...] = epilogue(acc_ref[...])
    else:
        acc = jnp.dot(a_ref[...], b_ref[...],
                      preferred_element_type=jnp.float32)
        o_ref[...] = epilogue(acc)


def ibn_relu_kernel(x_ref, ing_ref, inb_ref, o_ref, *, half):
    """InstanceNorm (affine) on channels [0, half), identity on the rest, ReLU.

    x_ref: (1, HW, C) block (one sample).  IN stats are per-channel over HW.
    The BN-half affine has already been folded into the preceding conv.
    """
    x = x_ref[0].astype(jnp.float32)                      # (HW, C)
    x_in = x[:, 0:half]
    mean = jnp.mean(x_in, axis=0, keepdims=True)
    var = jnp.mean(jnp.square(x_in - mean), axis=0, keepdims=True)
    y_in = (x_in - mean) * lax.rsqrt(var + 1e-5) * ing_ref[...] + inb_ref[...]
    y_in = jnp.maximum(y_in, 0.0)
    y_bn = jnp.maximum(x[:, half:], 0.0)
    o_ref[0] = jnp.concatenate([y_in, y_bn], axis=-1).astype(o_ref.dtype)


def maxpool_kernel(x_ref, o_ref):
    """x_ref: (KK, TM, C) stacked shifted windows -> max over KK taps."""
    o_ref[...] = jnp.max(x_ref[...], axis=0)


# ----------------------------------------------------------------------------
# Wrappers around the kernels
# ----------------------------------------------------------------------------
def _round_up(x, m):
    return (x + m - 1) // m * m


def _pad_dim(d, align, max_tile):
    p = _round_up(d, align)
    if p <= max_tile:
        return p, p
    return _round_up(p, max_tile), max_tile


def _choose_k(K, max_tk=2048):
    """Pick (Kp, TK): single tile when possible, else waste-minimizing tile."""
    Kp = _round_up(K, 128)
    if Kp <= max_tk:
        return Kp, Kp
    best = None
    for tk in range(max_tk, 255, -128):
        kp = _round_up(Kp, tk)
        cand = (kp - Kp, -tk, kp, tk)
        if best is None or cand < best:
            best = cand
    return best[2], best[3]


def gemm_bn_act(a, b, scale, bias, residual=None, relu=False,
                out_dtype=jnp.bfloat16):
    """out = relu( (a @ b) * scale + bias [+ residual] ), bf16 in / f32 acc."""
    M, K = a.shape
    _, N = b.shape
    Mp, TM = _pad_dim(M, 16, 256)
    Kp, TK = _choose_k(K)
    Np, TN = _pad_dim(N, 128, 256)

    a_p = jnp.pad(a.astype(jnp.bfloat16), ((0, Mp - M), (0, Kp - K)))
    b_p = jnp.pad(b.astype(jnp.bfloat16), ((0, Kp - K), (0, Np - N)))
    s_p = jnp.pad(scale.astype(jnp.float32), (0, Np - N)).reshape(1, Np)
    c_p = jnp.pad(bias.astype(jnp.float32), (0, Np - N)).reshape(1, Np)

    has_res = residual is not None
    multi_k = (Kp // TK) > 1

    operands = [a_p, b_p, s_p, c_p]
    in_specs = [
        pl.BlockSpec((TM, TK), lambda i, j, k: (i, k)),
        pl.BlockSpec((TK, TN), lambda i, j, k: (k, j)),
        pl.BlockSpec((1, TN), lambda i, j, k: (0, j)),
        pl.BlockSpec((1, TN), lambda i, j, k: (0, j)),
    ]
    if has_res:
        r_p = jnp.pad(residual.astype(jnp.bfloat16),
                      ((0, Mp - M), (0, Np - N)))
        operands.append(r_p)
        in_specs.append(pl.BlockSpec((TM, TN), lambda i, j, k: (i, j)))

    scratch = [pltpu.VMEM((TM, TN), jnp.float32)] if multi_k else []
    grid = (Mp // TM, Np // TN, Kp // TK)
    kernel = functools.partial(gemm_kernel, relu=relu, has_res=has_res,
                               multi_k=multi_k)

    out_bytes = Mp * Np * (2 if out_dtype == jnp.bfloat16 else 4)
    bytes_accessed = (a_p.size * 2 + b_p.size * 2 + s_p.size * 4 +
                      c_p.size * 4 + out_bytes +
                      (Mp * Np * 2 if has_res else 0))

    out = pl.pallas_call(
        kernel,
        out_shape=jax.ShapeDtypeStruct((Mp, Np), out_dtype),
        grid_spec=pltpu.PrefetchScalarGridSpec(
            num_scalar_prefetch=0,
            grid=grid,
            in_specs=in_specs,
            out_specs=pl.BlockSpec((TM, TN), lambda i, j, k: (i, j)),
            scratch_shapes=scratch,
        ),
        compiler_params=pltpu.CompilerParams(
            dimension_semantics=("parallel", "parallel", "arbitrary"),
            vmem_limit_bytes=32 * 1024 * 1024),
        cost_estimate=pl.CostEstimate(
            flops=int(2 * Mp * Np * Kp),
            transcendentals=0,
            bytes_accessed=int(bytes_accessed)),
    )(*operands)
    return out[:M, :N]


def extract_patches(x, kh, kw, stride, pad, pad_value=0.0):
    """x: (N,H,W,C) -> (N, Ho, Wo, kh*kw, C) im2col patches (plain-JAX glue)."""
    xp = jnp.pad(x, ((0, 0), (pad, pad), (pad, pad), (0, 0)),
                 constant_values=pad_value)
    _, Hp, Wp, _ = xp.shape
    Ho = (Hp - kh) // stride + 1
    Wo = (Wp - kw) // stride + 1
    cols = []
    for i in range(kh):
        for j in range(kw):
            cols.append(xp[:, i::stride, j::stride, :][:, :Ho, :Wo, :])
    return jnp.stack(cols, axis=3)


def conv2d_fused(x, w, stride=1, padding=0, scale=None, bias=None,
                 relu=False, residual=None):
    """Conv (NHWC bf16 in/out, PyTorch OIHW weights) + BN affine + ReLU."""
    Cout, Cin, kh, kw = w.shape
    if kh == 1 and kw == 1:
        xs = x[:, ::stride, ::stride, :]
        N, Ho, Wo, _ = xs.shape
        a = xs.reshape(N * Ho * Wo, Cin)
    else:
        p = extract_patches(x, kh, kw, stride, padding, 0.0)
        N, Ho, Wo = p.shape[:3]
        a = p.reshape(N * Ho * Wo, kh * kw * Cin)
    b = jnp.transpose(w, (2, 3, 1, 0)).reshape(kh * kw * Cin, Cout)
    if scale is None:
        scale = jnp.ones((Cout,), jnp.float32)
    if bias is None:
        bias = jnp.zeros((Cout,), jnp.float32)
    res = residual.reshape(N * Ho * Wo, Cout) if residual is not None else None
    out = gemm_bn_act(a, b, scale, bias, residual=res, relu=relu)
    return out.reshape(N, Ho, Wo, Cout)


def maxpool2d(x, k=3, stride=2, pad=1):
    p = extract_patches(x, k, k, stride, pad, pad_value=-jnp.inf)
    N, Ho, Wo, KK, C = p.shape
    M = N * Ho * Wo
    stacked = jnp.moveaxis(p, 3, 0).reshape(KK, M, C)
    TM = min(512, _round_up(M, 16))
    Mp = _round_up(M, TM)
    if Mp != M:
        stacked = jnp.pad(stacked, ((0, 0), (0, Mp - M), (0, 0)))
    out = pl.pallas_call(
        maxpool_kernel,
        out_shape=jax.ShapeDtypeStruct((Mp, C), x.dtype),
        grid_spec=pltpu.PrefetchScalarGridSpec(
            num_scalar_prefetch=0,
            grid=(Mp // TM,),
            in_specs=[pl.BlockSpec((KK, TM, C), lambda i: (0, i, 0))],
            out_specs=pl.BlockSpec((TM, C), lambda i: (i, 0)),
        ),
        compiler_params=pltpu.CompilerParams(
            dimension_semantics=("parallel",)),
    )(stacked)
    return out[:M].reshape(N, Ho, Wo, C)


def bn_affine(gamma, beta, mean, var, eps=1e-5):
    scale = gamma / jnp.sqrt(var + eps)
    bias = beta - mean * scale
    return scale, bias


def ibn_relu(x, p):
    """x: (N,H,W,C) bf16. InstanceNorm on first-half channels + ReLU on all.

    (The BN-half affine was already fused into the preceding conv epilogue.)
    """
    N, H, W, C = x.shape
    half = p['in_gamma'].shape[0]
    xf = x.reshape(N, H * W, C)
    in_g = p['in_gamma'].astype(jnp.float32).reshape(1, half)
    in_b = p['in_beta'].astype(jnp.float32).reshape(1, half)
    kernel = functools.partial(ibn_relu_kernel, half=half)
    out = pl.pallas_call(
        kernel,
        out_shape=jax.ShapeDtypeStruct((N, H * W, C), x.dtype),
        grid_spec=pltpu.PrefetchScalarGridSpec(
            num_scalar_prefetch=0,
            grid=(N,),
            in_specs=[
                pl.BlockSpec((1, H * W, C), lambda n: (n, 0, 0)),
                pl.BlockSpec((1, half), lambda n: (0, 0)),
                pl.BlockSpec((1, half), lambda n: (0, 0)),
            ],
            out_specs=pl.BlockSpec((1, H * W, C), lambda n: (n, 0, 0)),
        ),
        compiler_params=pltpu.CompilerParams(
            dimension_semantics=("parallel",)),
    )(xf, in_g, in_b)
    return out.reshape(N, H, W, C)


# ----------------------------------------------------------------------------
# Parameter construction (deterministic, mimics the PyTorch __init__ init)
# ----------------------------------------------------------------------------
def init_conv(key, cout, cin, kh, kw):
    n = kh * kw * cout
    std = math.sqrt(2.0 / n)
    return jax.random.normal(key, (cout, cin, kh, kw), jnp.float32) * std


def init_bn(c):
    return dict(gamma=jnp.ones((c,), jnp.float32),
                beta=jnp.zeros((c,), jnp.float32),
                mean=jnp.zeros((c,), jnp.float32),
                var=jnp.ones((c,), jnp.float32))


def make_bottleneck(key, inplanes, planes, ibn, stride, downsample):
    k = jax.random.split(key, 4)
    p = {'stride': stride, 'ibn_flag': ibn}
    p['conv1'] = init_conv(k[0], planes, inplanes, 1, 1)
    if ibn:
        half = planes // 2
        p['ibn'] = dict(in_gamma=jnp.ones((half,), jnp.float32),
                        in_beta=jnp.zeros((half,), jnp.float32),
                        bn_gamma=jnp.ones((planes - half,), jnp.float32),
                        bn_beta=jnp.zeros((planes - half,), jnp.float32),
                        bn_mean=jnp.zeros((planes - half,), jnp.float32),
                        bn_var=jnp.ones((planes - half,), jnp.float32))
    else:
        p['bn1'] = init_bn(planes)
    p['conv2'] = init_conv(k[1], planes, planes, 3, 3)
    p['bn2'] = init_bn(planes)
    p['conv3'] = init_conv(k[2], planes * 4, planes, 1, 1)
    p['bn3'] = init_bn(planes * 4)
    if downsample:
        p['ds_conv'] = init_conv(k[3], planes * 4, inplanes, 1, 1)
        p['ds_bn'] = init_bn(planes * 4)
    return p


def make_layer(key, inplanes, planes, blocks, stride=1):
    keys = jax.random.split(key, blocks)
    ibn = (planes != 512)
    downsample = (stride != 1) or (inplanes != planes * 4)
    layer = [make_bottleneck(keys[0], inplanes, planes, ibn, stride, downsample)]
    inplanes = planes * 4
    for i in range(1, blocks):
        layer.append(make_bottleneck(keys[i], inplanes, planes, ibn, 1, False))
    return layer, inplanes


def init_resnet_ibn(key, layers, last_stride):
    keys = jax.random.split(key, 5)
    params = {'conv1': init_conv(keys[0], 64, 3, 7, 7), 'bn1': init_bn(64)}
    inplanes = 64
    params['layer1'], inplanes = make_layer(keys[1], inplanes, 64, layers[0], 1)
    params['layer2'], inplanes = make_layer(keys[2], inplanes, 128, layers[1], 2)
    params['layer3'], inplanes = make_layer(keys[3], inplanes, 256, layers[2], 2)
    params['layer4'], inplanes = make_layer(keys[4], inplanes, 512, layers[3],
                                            last_stride)
    return params


# ----------------------------------------------------------------------------
# Forward pass
# ----------------------------------------------------------------------------
def bottleneck_forward(x, p):
    stride = p['stride']
    if 'ds_conv' in p:
        s, b = bn_affine(**p['ds_bn'])
        residual = conv2d_fused(x, p['ds_conv'], stride=stride, scale=s, bias=b)
    else:
        residual = x

    if p['ibn_flag']:
        ib = p['ibn']
        half = ib['in_gamma'].shape[0]
        bn_s, bn_b = bn_affine(ib['bn_gamma'], ib['bn_beta'],
                               ib['bn_mean'], ib['bn_var'])
        # BN-half affine folded into conv1 epilogue; IN half gets identity.
        scale1 = jnp.concatenate([jnp.ones((half,), jnp.float32), bn_s])
        bias1 = jnp.concatenate([jnp.zeros((half,), jnp.float32), bn_b])
        out = conv2d_fused(x, p['conv1'], scale=scale1, bias=bias1)
        out = ibn_relu(out, ib)                            # IN + ReLU kernel
    else:
        s, b = bn_affine(**p['bn1'])
        out = conv2d_fused(x, p['conv1'], scale=s, bias=b, relu=True)

    s, b = bn_affine(**p['bn2'])
    out = conv2d_fused(out, p['conv2'], stride=stride, padding=1,
                       scale=s, bias=b, relu=True)

    s, b = bn_affine(**p['bn3'])
    out = conv2d_fused(out, p['conv3'], scale=s, bias=b, relu=True,
                       residual=residual)
    return out


def resnet_ibn_forward(x_nchw, params):
    x = jnp.transpose(x_nchw, (0, 2, 3, 1)).astype(jnp.bfloat16)  # NCHW->NHWC
    s, b = bn_affine(**params['bn1'])
    x = conv2d_fused(x, params['conv1'], stride=2, padding=3,
                     scale=s, bias=b, relu=True)           # conv1+bn1+relu
    x = maxpool2d(x, 3, 2, 1)                              # maxpool
    for name in ('layer1', 'layer2', 'layer3', 'layer4'):
        for blk in params[name]:
            x = bottleneck_forward(x, blk)
    return jnp.transpose(x, (0, 3, 1, 2)).astype(jnp.float32)  # back to NCHW


# ----------------------------------------------------------------------------
if __name__ == "__main__":
    key = jax.random.PRNGKey(0)
    k_param, k_data = jax.random.split(key)

    # Small but structurally-faithful config: Bottleneck (expansion=4),
    # layers=[1,1,1,1], last_stride=1 (as used in re-id).
    params = init_resnet_ibn(k_param, layers=[1, 1, 1, 1], last_stride=1)

    x = jax.random.normal(k_data, (2, 3, 64, 64), jnp.float32)   # NCHW input

    out = resnet_ibn_forward(x, params)
    out = jax.block_until_ready(out)

    assert out.shape == (2, 2048, 4, 4), out.shape
    assert bool(jnp.all(jnp.isfinite(out)))
    print("KERNEL_OK")
</pallas_src>

<mosaic_0001>
module attributes {stable_mosaic.version = 11 : i64} {
  func.func @gemm_kernel(%arg0: i32, %arg1: i32, %arg2: i32, %arg3: memref<256x256xbf16, #tpu.memory_space<vmem>>, %arg4: memref<256x128xbf16, #tpu.memory_space<vmem>>, %arg5: memref<1x128xf32, #tpu.memory_space<vmem>>, %arg6: memref<1x128xf32, #tpu.memory_space<vmem>>, %arg7: memref<256x128xbf16, #tpu.memory_space<vmem>>) attributes {dimension_semantics = [#tpu.dimension_semantics<parallel>, #tpu.dimension_semantics<parallel>, #tpu.dimension_semantics<arbitrary>], iteration_bounds = array<i64: 8, 1, 1>, scalar_prefetch = 0 : i64, scratch_operands = 0 : i64, tpu.core_type = #tpu.core_type<tc>, window_params = [{transform_indices = @transform_0, window_bounds = array<i64: 256, 256>}, {transform_indices = @transform_1, window_bounds = array<i64: 256, 128>}, {transform_indices = @transform_2, window_bounds = array<i64: 1, 128>}, {transform_indices = @transform_3, window_bounds = array<i64: 1, 128>}, {transform_indices = @transform_4, window_bounds = array<i64: 256, 128>}]} {
    %c0 = arith.constant 0 : index
    %c0_0 = arith.constant 0 : index
    %0 = vector.load %arg3[%c0, %c0_0] : memref<256x256xbf16, #tpu.memory_space<vmem>>, vector<256x256xbf16>
    %c0_1 = arith.constant 0 : index
    %c0_2 = arith.constant 0 : index
    %1 = vector.load %arg4[%c0_1, %c0_2] : memref<256x128xbf16, #tpu.memory_space<vmem>>, vector<256x128xbf16>
    %cst = arith.constant dense<0.000000e+00> : vector<256x128xf32>
    %2 = tpu.matmul %0, %1, %cst {dimension_numbers = #tpu.dot_dimension_numbers<[1], [0], [0], [1], [0, 0, 1, 1], [], []>} : vector<256x256xbf16>, vector<256x128xbf16>, vector<256x128xf32> -> vector<256x128xf32>
    %c0_3 = arith.constant 0 : index
    %c0_4 = arith.constant 0 : index
    %3 = vector.load %arg5[%c0_3, %c0_4] : memref<1x128xf32, #tpu.memory_space<vmem>>, vector<1x128xf32>
    %4 = vector.broadcast %3 : vector<1x128xf32> to vector<256x128xf32>
    %5 = arith.mulf %2, %4 : vector<256x128xf32>
    %c0_5 = arith.constant 0 : index
    %c0_6 = arith.constant 0 : index
    %6 = vector.load %arg6[%c0_5, %c0_6] : memref<1x128xf32, #tpu.memory_space<vmem>>, vector<1x128xf32>
    %7 = vector.broadcast %6 : vector<1x128xf32> to vector<256x128xf32>
    %8 = arith.addf %5, %7 : vector<256x128xf32>
    %cst_7 = arith.constant 0.000000e+00 : f32
    %9 = vector.broadcast %cst_7 : f32 to vector<256x128xf32>
    %10 = arith.maximumf %8, %9 : vector<256x128xf32>
    %11 = arith.truncf %10 : vector<256x128xf32> to vector<256x128xbf16>
    %c0_8 = arith.constant 0 : index
    %c0_9 = arith.constant 0 : index
    %12 = vector.load %arg7[%c0_8, %c0_9] : memref<256x128xbf16, #tpu.memory_space<vmem>>, vector<256x128xbf16>
    tpu.vector_store %arg7[%c0_8, %c0_9], %11 {strides = array<i32>} : memref<256x128xbf16, #tpu.memory_space<vmem>>, vector<256x128xbf16>,
    return
  }
  func.func @transform_0(%arg0: i32, %arg1: i32, %arg2: i32) -> (i32, i32) {
    %c0_i32 = arith.constant 0 : i32
    return %arg0, %arg2 : i32, i32
  }
  func.func @transform_1(%arg0: i32, %arg1: i32, %arg2: i32) -> (i32, i32) {
    %c0_i32 = arith.constant 0 : i32
    return %arg2, %arg1 : i32, i32
  }
  func.func @transform_2(%arg0: i32, %arg1: i32, %arg2: i32) -> (i32, i32) {
    %c0_i32 = arith.constant 0 : i32
    %c0_i32_0 = arith.constant 0 : i32
    return %c0_i32, %arg1 : i32, i32
  }
  func.func @transform_3(%arg0: i32, %arg1: i32, %arg2: i32) -> (i32, i32) {
    %c0_i32 = arith.constant 0 : i32
    %c0_i32_0 = arith.constant 0 : i32
    return %c0_i32, %arg1 : i32, i32
  }
  func.func @transform_4(%arg0: i32, %arg1: i32, %arg2: i32) -> (i32, i32) {
    %c0_i32 = arith.constant 0 : i32
    return %arg0, %arg1 : i32, i32
  }
}

</mosaic_0001>

<bundles_post_ra>
// kernel: tpu_custom_call.1
= control target key start
LH: loop header
LB: loop body
LE: loop exit
PB: predicated region body
PF: predicated region fallthrough
CT: control target
= control target key end

     0   :  { %9 = vsyncpa [#allocation3], 0  ;;  %s2222_s0 = inlined_call_operand.hbm [shape: bf16[2048,256], index: 0, kind: input, shape index: {}]   ;;  %s2223_s1 = inlined_call_operand.hbm [shape: bf16[256,128], index: 1, kind: input, shape index: {}]   ;;  %s2224_s2 = inlined_call_operand.vmem [shape: f32[1,128], index: 2, kind: input, shape index: {}]   ;;  %s2225_s3 = inlined_call_operand.vmem [shape: f32[1,128], index: 3, kind: input, shape index: {}]   ;;  %s2226_s4 = inlined_call_operand.hbm [shape: bf16[2048,128], index: 4, kind: output, shape index: {}]  }
   0x1   :  { %11 = vsyncpa [#allocation3 + $0x1], 0 }
   0x2   :  { %12 = vsyncpa [#allocation6], 0 }
   0x3   :  { %13 = vsyncpa [#allocation4], 0 }
   0x4   :  { %15 = vsyncpa [#allocation4 + $0x1], 0  ;;  %s1877_s15 = smov 0   ;;  %s1879_s16 = smov 0  }
   0x5   :  { %s1881_s17 = smov 0   ;;  %s1883_s18 = smov 0  }
   0x6   :  { %s1885_s19 = smov 0   ;;  %s1887_s20 = smov 0  }
   0x7 LB: > { %s1194_s21 = sadd.s32 4294967295, %s1841_s20   ;;  %s1195_s22 = sadd.s32 4294967294, %s1841_s20   ;;  %s1841_s20 = sphi %s1887_s20, %s21_s20   ;;  %s1837_s19 = sphi %s1885_s19, %s2249_s19   ;;  %s1833_s18 = sphi %s1883_s18, %s2248_s18   ;;  %s1829_s17 = sphi %s1881_s17, %s2247_s17   ;;  %s1825_s16 = sphi %s1879_s16, %s2246_s16   ;;  %s1821_s15 = sphi %s1877_s15, %s2245_s15  }
   0x8   : > { %p62_p0 = scmp.ne.s32.totalorder %s1825_s16, %s1821_s15  ;;  %p1911_p1 = scmp.eq.s32.totalorder %s1194_s21, 0 }
   0x9   : > { %p1915_p2 = scmp.eq.s32.totalorder %s1194_s21, 7  ;;  %p174_p3 = scmp.eq.s32.totalorder %s1195_s22, 7 }
   0xa   : > { %s2231_s23 = scalar_select %p1911_p1, 1, 0 }
   0xb   : > { %s2232_s24 = scalar_select %p1915_p2, 1, 0 }
   0xc   : > { %p1921_p4 = por %p1911_p1, %p62_p0  ;;  %p1196_p5 = scmp.ge.s32.totalorder %s1841_s20, 1 }
   0xd   : > { %p1926_p6 = por %p174_p3, %p62_p0  ;;  %p181_p7 = scmp.lt.s32.totalorder %s1841_s20, 9 }
   0xe   : > { %s2233_s25 = scalar_select %p1921_p4, 1, 0 }
   0xf   : > { %s2234_s26 = scalar_select %p1926_p6, 1, 0 }
  0x10   : > { %p1931_p8 = pnand %p1196_p5, %p181_p7  ;;  %s1843_s28 = smov [#allocation5]  }
  0x11   : > { %s197_s29 = sshll.u32 %s1843_s28, 4  ;;  %s40_s5 = sadd.s32 1, %s1837_s19  ;;  %s198_s29 = int_to_ptr.vmem [resolvable:$true] %s197_s29 }
  0x12   : > { %s2235_s27 = scalar_select %p1931_p8, 1, 0 }
  0x13   : > { %p1562_p9 = pneg %p1931_p8  ;;  %s1697_s8 = scalar_lea.hbm %s2223_s1, 2048 }
  0x14   : > { %p1698_p11 = scmp.ne.s32.totalorder %s2223_s1, %s1697_s8  ;;  %p1704_p3 = scmp.lt.u32.totalorder %s1697_s8, %s2223_s1 }
  0x15   : > { %p1939_p10 = pnand %p1562_p9, %p1911_p1 }
  0x17   : > { %p1699_p12 = pneg %p1939_p10 }
  0x19   : > { %p1700_p13 = pnand %p1699_p12, %p1698_p11 }
  0x1b   : > { %p1701_p0 = pneg %p1700_p13 }
  0x1d   : > { %p1706_p5 = pnand %p1704_p3, %p1701_p0 }
  0x1f   : > { %1709 = shalt.err (!%p1706_p5)
}
  0x20   : > { %s1710_s13 = scalar_lea.vmem %s198_s29, 2048  ;;  %p1718_p1 = scmp.lt.s32.totalorder %s198_s29, %s198_s29 }
  0x21   : > { %p1711_p7 = scmp.ne.s32.totalorder %s198_s29, %s1710_s13  ;;  %p1719_p4 = scmp.lt.s32.totalorder %s1710_s13, %s1710_s13 }
  0x23   : > { %p1713_p9 = pnand %p1711_p7, %p1699_p12  ;;  %p1720_p8 = por %p1719_p4, %p1718_p1 }
  0x25   : > { %p1714_p6 = pneg %p1713_p9 }
  0x27   : > { %p1721_p2 = pnand %p1720_p8, %p1714_p6 }
  0x29   : > { %1724 = shalt.err (!%p1721_p2)
}
  0x2a   : > { %s1844_s14 = smov 64   ;;  %s1845_s21 = smov 4  }
  0x2b   : > { %1565 = dma.hbm_to_vmem [thread:$0]  (!%p1939_p10), %s2223_s1, 2048, %s198_s29, [#allocation6], %s1844_s14, %s1844_s14, %s1845_s21  }
  0x2c   : > { %p42_p1 = scmp.ge.s32.totalorder %s40_s5, 8  ;;  %s49_s6 = sadd.s32 1, %s1829_s17 }
  0x2d   : > { %p56_p2 = scmp.ne.s32.totalorder %s1829_s17, %s1825_s16  ;;  %p57_p4 = scmp.eq.s32.totalorder %s1841_s20, 0 }
  0x2e   : > { %s2251_s5 = smov (%p42_p1, %s40_s5), 0  ;;  %p2238_p8 = scmp.ne.s32.totalorder %s2232_s24, 0 }
  0x2f   : > { %p1966_p6 = por %p57_p4, %p56_p2  ;;  %s44_s30 = ssub.s32 %s1837_s19, %s2251_s5 }
  0x30   : > { %p1972_p11 = por %p2238_p8, %p56_p2  ;;  %p1575_p12 = scmp.lt.s32.totalorder %s1841_s20, 8 }
  0x31   : > { %p47_p10 = scmp.eq.s32.totalorder %s44_s30, 0  ;;  %s223_s29 = sand.u32 1, %s1829_s17  }
  0x32   : > { %s1201_s9 = sshll.u32 %s223_s29, 8  ;;  %s1297_s11 = sshll.u32 %s1837_s19, 12 }
  0x33   : > { %s1981_s10 = scalar_select %p47_p10, %s1829_s17, %s49_s6  }
  0x34   : > { %s1987_s14 = scalar_lea.hbm %s2222_s0, %s1297_s11  ;;  %s227_s24 = scalar_lea.vmem [#allocation2], %s1201_s9 }
  0x35   : > { %s237_s21 = sshll.u32 %s227_s24, 4  ;;  %p1993_p13 = pnand %p1575_p12, %p1966_p6  ;;  %s1989_s21 = int_to_ptr.vmem [resolvable:$true] %s237_s21 }
  0x36   : > { %s1997_s28 = scalar_lea.sflag [#allocation3], %s223_s29  ;;  %s1725_s6 = scalar_lea.hbm %s1987_s14, 4096 }
  0x37   : > { %p1726_p0 = scmp.ne.s32.totalorder %s1987_s14, %s1725_s6  ;;  %p1727_p3 = pneg %p1993_p13 }
  0x38   : > { %s1730_s7 = scalar_lea.hbm %s2222_s0, 32768  ;;  %p1731_p9 = scmp.lt.u32.totalorder %s1987_s14, %s2222_s0 }
  0x39   : > { %p1728_p5 = pnand %p1727_p3, %p1726_p0  ;;  %p1732_p1 = scmp.lt.u32.totalorder %s1730_s7, %s1725_s6 }
  0x3a   : > { %p1734_p4 = scmp.lt.u32.totalorder %s1725_s6, %s1987_s14 }
  0x3b   : > { %p1729_p7 = pneg %p1728_p5  ;;  %p1733_p2 = por %p1732_p1, %p1731_p9 }
  0x3d   : > { %p1735_p6 = por %p1734_p4, %p1733_p2 }
  0x3f   : > { %p1736_p8 = pnand %p1735_p6, %p1729_p7 }
  0x41   : > { %1739 = shalt.err (!%p1736_p8)
}
  0x42   : > { %s1740_s29 = scalar_lea.vmem %s1989_s21, 4096  ;;  %s1846_s13 = smov [#allocation2]  }
  0x43   : > { %p1741_p12 = scmp.ne.s32.totalorder %s1989_s21, %s1740_s29  ;;  %s1745_s24 = sshll.u32 %s1846_s13, 4  ;;  %s1746_s24 = int_to_ptr.vmem [resolvable:$false] %s1745_s24 }
  0x44   : > { %s1747_s30 = scalar_lea.vmem %s1746_s24, 8192  ;;  %p1748_p5 = scmp.lt.s32.totalorder %s1989_s21, %s1746_s24 }
  0x45   : > { %p1743_p10 = pnand %p1741_p12, %p1727_p3  ;;  %p1749_p9 = scmp.lt.s32.totalorder %s1747_s30, %s1740_s29 }
  0x47   : > { %p1744_p0 = pneg %p1743_p10  ;;  %p1750_p1 = por %p1749_p9, %p1748_p5 }
  0x49   : > { %p1751_p2 = pnand %p1750_p1, %p1744_p0 }
  0x4b   : > { %1754 = shalt.err (!%p1751_p2)
}
  0x4c   : > { %s1847_s6 = smov 128   ;;  %s1848_s9 = smov 8  }
  0x4d   : > { %1569 = dma.hbm_to_vmem [thread:$0]  (!%p1993_p13), %s1987_s14, 4096, %s1989_s21, %s1997_s28, %s1847_s6, %s1847_s6, %s1848_s9  }
  0x4e   : > { %p2241_p3 = scmp.ne.s32.totalorder %s2235_s27, 0 }
  0x4f   : > { %s2028_s7 = sand.u32 (!%p2241_p3), 1, %s1825_s16   ;;  %p2242_p7 = scmp.ne.s32.totalorder (!%p2241_p3), %s2233_s25, 0 }
  0x50   : > { %249 = sbr.rel (%p2241_p3) target bundleno = 421 (0x1a5), region = 36  ;;  %s1206_s11 = sshll.u32 (!%p2241_p3), %s2028_s7, 8 }
  0x51   : > { %s252_s12 = scalar_lea.sflag (!%p2241_p3), [#allocation3], %s2028_s7  ;;  %s2032_s29 = scalar_lea.vmem (!%p2241_p3), [#allocation2], %s1206_s11 }
  0x57   : > { %1808 = dma.done.wait (%p2242_p7), %s252_s12, 4096  }
  0x58   : > { %1810 = vsyncadd (%p2242_p7), %s252_s12, 4294963200  ;;  %p2243_p13 = scmp.ne.s32.totalorder %s2231_s23, 0 }
  0x5a   : > { %1812 = dma.done.wait (%p2243_p13), [#allocation6], 2048  }
  0x5b   : > { %1814 = vsyncadd (%p2243_p13), [#allocation6], 4294965248  ;;  %v1633_v0 = vld [vmem:[#allocation5 + $0x40] sm:$0xff]   ;;  %v1635_v2 = vld [vmem:[#allocation5 + $0x48] sm:$0xff]   ;;  %s1208_s21 = sshll.u32 %s2028_s7, 7  ;;  %s1330_s28 = sshll.u32 %s1833_s18, 11 }
  0x5c   : > { %v1634_v1 = vld [vmem:[#allocation5] sm:$0xff]   ;;  %1426 = vmatprep.subr.bf16.mxu0 %v1633_v0  ;;  %1538 = vmatprep.subr.bf16.mxu1 %v1633_v0  ;;  %v1636_v3 = vld [vmem:[#allocation5 + $0x8] sm:$0xff]   ;;  %v1637_v4 = vld [vmem:[#allocation5 + $0x50] sm:$0xff]   ;;  %s2095_s22 = scalar_lea.vmem [#allocation7], %s1208_s21  ;;  %s2170_s6 = scalar_lea.hbm %s2226_s4, %s1330_s28 }
  0x5d   : > { %1427 = vmatpush3.bf16.msra.mxu0 %v1634_v1  ;;  %1546 = vmatpush3.bf16.msra.mxu1 %v1634_v1  ;;  %v1638_v5 = vld [vmem:[#allocation5 + $0x10] sm:$0xff]   ;;  %v1639_v6 = vld [vmem:[#allocation5 + $0x58] sm:$0xff]   ;;  %v1641_v8 = vld [vmem:[#allocation5 + $0x60] sm:$0xff]   ;;  %s1067_s13 = sshll.u32 %s2095_s22, 4  ;;  %s1053_s18 = scalar_lea.sflag [#allocation4], %s2028_s7  ;;  %s2172_s13 = int_to_ptr.vmem [resolvable:$true] %s1067_s13 }
  0x5e   : > { %1428 = vmatprep.subr.bf16.mxu0 %v1635_v2  ;;  %1539 = vmatprep.subr.bf16.mxu1 %v1635_v2  ;;  %v1640_v7 = vld [vmem:[#allocation5 + $0x18] sm:$0xff]   ;;  %v1642_v9 = vld [vmem:[#allocation5 + $0x20] sm:$0xff]   ;;  %v1643_v10 = vld [vmem:[#allocation5 + $0x68] sm:$0xff]   ;;  %s1755_s9 = scalar_lea.vmem %s2172_s13, 2048  ;;  %s1849_s11 = smov [#allocation7]  }
  0x5f   : > { %v1651_v11 = vld [vmem:[%s2032_s29 + $0x4] ss:$8 sps:$4 sm:$0xff]   ;;  %v1645_v14 = vld [vmem:[#allocation5 + $0x70] sm:$0xff]   ;;  %v1647_v16 = vld [vmem:[#allocation5 + $0x78] sm:$0xff]   ;;  %p1756_p4 = scmp.ne.s32.totalorder %s2172_s13, %s1755_s9  ;;  %s1759_s12 = sshll.u32 %s1849_s11, 4  ;;  %s1760_s12 = int_to_ptr.vmem [resolvable:$false] %s1759_s12 }
  0x60   : > { %v1654_v12 = vld [vmem:[%s2032_s29 + $0x84] ss:$8 sps:$4 sm:$0xff]   ;;  %653 = vmatprep.mubr.bf16.mxu0 %v1651_v11  ;;  %v1646_v15 = vld [vmem:[#allocation5 + $0x30] sm:$0xff]   ;;  %v1648_v17 = vld [vmem:[#allocation5 + $0x38] sm:$0xff]   ;;  %p1762_p12 = scmp.lt.s32.totalorder %s2172_s13, %s1760_s12 }
  0x61   : > { %1429 = vmatpush3.bf16.msra.mxu0 %v1636_v3  ;;  %1547 = vmatpush3.bf16.msra.mxu1 %v1636_v3  ;;  %v1644_v13 = vld [vmem:[#allocation5 + $0x28] sm:$0xff]   ;;  %v1655_v20 = vld [vmem:[%s2032_s29 + $0x14] ss:$8 sps:$4 sm:$0xff]   ;;  %v1659_v22 = vld [vmem:[%s2032_s29 + $0x10] ss:$8 sps:$4 sm:$0xff]   ;;  %p1757_p6 = pnand %p1756_p4, %p1972_p11 }
  0x62   : > { %1430 = vmatprep.subr.bf16.mxu0 %v1637_v4  ;;  %1540 = vmatprep.subr.bf16.mxu1 %v1637_v4  ;;  %v1649_v18 = vld [vmem:[%s2032_s29] ss:$8 sps:$4 sm:$0xff]   ;;  %v1657_v21 = vld [vmem:[%s2032_s29 + $0x94] ss:$8 sps:$4 sm:$0xff]   ;;  %v1660_v23 = vld [vmem:[%s2032_s29 + $0x90] ss:$8 sps:$4 sm:$0xff]  }
  0x63   : > { %717 = vmatprep.mubr.bf16.mxu1 %v1654_v12  ;;  %v1652_v19 = vld [vmem:[%s2032_s29 + $0x80] ss:$8 sps:$4 sm:$0xff]   ;;  %v1661_v24 = vld [vmem:[%s2032_s29 + $0x24] ss:$8 sps:$4 sm:$0xff]   ;;  %v1667_v28 = vld [vmem:[%s2032_s29 + $0x34] ss:$8 sps:$4 sm:$0xff]   ;;  %p1758_p8 = pneg %p1757_p6 }
  0x64   : > { %v1663_v25 = vld [vmem:[%s2032_s29 + $0xa4] ss:$8 sps:$4 sm:$0xff]   ;;  %v1665_v26 = vld [vmem:[%s2032_s29 + $0x20] ss:$8 sps:$4 sm:$0xff]   ;;  %v1669_v29 = vld [vmem:[%s2032_s29 + $0xb4] ss:$8 sps:$4 sm:$0xff]  }
  0x65   : > { %1431 = vmatpush3.bf16.msra.mxu0 %v1638_v5  ;;  %1548 = vmatpush3.bf16.msra.mxu1 %v1638_v5  ;;  %v1666_v27 = vld [vmem:[%s2032_s29 + $0xa0] ss:$8 sps:$4 sm:$0xff]   ;;  %v1671_v30 = vld [vmem:[%s2032_s29 + $0x30] ss:$8 sps:$4 sm:$0xff]   ;;  %v1673_v32 = vld [vmem:[%s2032_s29 + $0x44] ss:$8 sps:$4 sm:$0xff]  }
  0x66   : > { %1432 = vmatprep.subr.bf16.mxu0 %v1639_v6  ;;  %1541 = vmatprep.subr.bf16.mxu1 %v1639_v6  ;;  %v1672_v31 = vld [vmem:[%s2032_s29 + $0xb0] ss:$8 sps:$4 sm:$0xff]   ;;  %v1675_v33 = vld [vmem:[%s2032_s29 + $0xc4] ss:$8 sps:$4 sm:$0xff]   ;;  %v1677_v34 = vld [vmem:[%s2032_s29 + $0x40] ss:$8 sps:$4 sm:$0xff]  }
  0x67   : > { %v1678_v35 = vld [vmem:[%s2032_s29 + $0xc0] ss:$8 sps:$4 sm:$0xff]   ;;  %v1679_v36 = vld [vmem:[%s2032_s29 + $0x54] ss:$8 sps:$4 sm:$0xff]   ;;  %v1683_v38 = vld [vmem:[%s2032_s29 + $0x50] ss:$8 sps:$4 sm:$0xff]  }
  0x68   : > { %v1681_v37 = vld [vmem:[%s2032_s29 + $0xd4] ss:$8 sps:$4 sm:$0xff]   ;;  %v1684_v39 = vld [vmem:[%s2032_s29 + $0xd0] ss:$8 sps:$4 sm:$0xff]   ;;  %v1685_v40 = vld [vmem:[%s2032_s29 + $0x64] ss:$8 sps:$4 sm:$0xff]  }
  0x69   : > { %1433 = vmatpush3.bf16.msra.mxu0 %v1640_v7  ;;  %1549 = vmatpush3.bf16.msra.mxu1 %v1640_v7  ;;  %v1687_v41 = vld [vmem:[%s2032_s29 + $0xe4] ss:$8 sps:$4 sm:$0xff]   ;;  %v1689_v42 = vld [vmem:[%s2032_s29 + $0x60] ss:$8 sps:$4 sm:$0xff]   ;;  %v1691_v44 = vld [vmem:[%s2032_s29 + $0x74] ss:$8 sps:$4 sm:$0xff]  }
  0x6a   : > { %1434 = vmatprep.subr.bf16.mxu0 %v1641_v8  ;;  %1542 = vmatprep.subr.bf16.mxu1 %v1641_v8  ;;  %v1690_v43 = vld [vmem:[%s2032_s29 + $0xe0] ss:$8 sps:$4 sm:$0xff]   ;;  %v1693_v45 = vld [vmem:[%s2032_s29 + $0xf4] ss:$8 sps:$4 sm:$0xff]   ;;  %v1695_v46 = vld [vmem:[%s2032_s29 + $0x70] ss:$8 sps:$4 sm:$0xff]  }
  0x6b   : > { %v1696_v47 = vld [vmem:[%s2032_s29 + $0xf0] ss:$8 sps:$4 sm:$0xff]   ;;  %v2077_v51 = vld [vmem:[%s2224_s2] ss:$0 sm:$0xff]  ;;  %s1761_s29 = scalar_lea.vmem %s1760_s12, 4096 }
  0x6c   : > { %v2082_v57 = vld [vmem:[%s2225_s3] ss:$0 sm:$0xff]  ;;  %p1763_p10 = scmp.lt.s32.totalorder %s1761_s29, %s1755_s9 }
  0x6d   : > { %1435 = vmatpush3.bf16.msra.mxu0 %v1642_v9  ;;  %1550 = vmatpush3.bf16.msra.mxu1 %v1642_v9 }
  0x6e   : > { %1436 = vmatprep.subr.bf16.mxu0 %v1643_v10  ;;  %1543 = vmatprep.subr.bf16.mxu1 %v1643_v10  ;;  %p1764_p0 = por %p1763_p10, %p1762_p12 }
  0x70   : > { %p1765_p5 = pnand %p1764_p0, %p1758_p8 }
  0x71   : > { %1437 = vmatpush3.bf16.msra.mxu0 %v1644_v13  ;;  %1551 = vmatpush3.bf16.msra.mxu1 %v1644_v13 }
  0x72   : > { %1438 = vmatprep.subr.bf16.mxu0 %v1645_v14  ;;  %1544 = vmatprep.subr.bf16.mxu1 %v1645_v14 }
  0x75   : > { %1439 = vmatpush3.bf16.msra.mxu0 %v1646_v15  ;;  %1552 = vmatpush3.bf16.msra.mxu1 %v1646_v15 }
  0x76   : > { %1440 = vmatprep.subr.bf16.mxu0 %v1647_v16  ;;  %1545 = vmatprep.subr.bf16.mxu1 %v1647_v16 }
  0x79   : > { %1441 = vmatpush3.bf16.msra.mxu0 %v1648_v17  ;;  %1553 = vmatpush3.bf16.msra.mxu1 %v1648_v17 }
  0x7c   : > { %654 = vmatmul.mubr.bf16.vlgmr.msra.gmra.mrb[0].mxu0 %v1649_v18  ;;  %718 = vmatmul.mubr.bf16.vlgmr.msra.gmra.mrb[0].mxu1 %v1652_v19 }
  0x7d   : > { %661 = vmatprep.mubr.bf16.mxu0 %v1655_v20  ;;  %725 = vmatprep.mubr.bf16.mxu1 %v1657_v21 }
  0x84   : > { %662 = vmatmul.mubr.bf16.gmra.mrb[4].mxu0 %v1659_v22  ;;  %726 = vmatmul.mubr.bf16.gmra.mrb[4].mxu1 %v1660_v23 }
  0x85   : > { %669 = vmatprep.mubr.bf16.mxu0 %v1661_v24  ;;  %733 = vmatprep.mubr.bf16.mxu1 %v1663_v25 }
  0x8c   : > { %670 = vmatmul.mubr.bf16.gmra.mrb[8].mxu0 %v1665_v26  ;;  %734 = vmatmul.mubr.bf16.gmra.mrb[8].mxu1 %v1666_v27 }
  0x8d   : > { %677 = vmatprep.mubr.bf16.mxu0 %v1667_v28  ;;  %741 = vmatprep.mubr.bf16.mxu1 %v1669_v29 }
  0x94   : > { %678 = vmatmul.mubr.bf16.gmra.mrb[12].mxu0 %v1671_v30  ;;  %742 = vmatmul.mubr.bf16.gmra.mrb[12].mxu1 %v1672_v31 }
  0x95   : > { %685 = vmatprep.mubr.bf16.mxu0 %v1673_v32  ;;  %749 = vmatprep.mubr.bf16.mxu1 %v1675_v33 }
  0x9c   : > { %686 = vmatmul.mubr.bf16.gmra.mrb[16].mxu0 %v1677_v34  ;;  %750 = vmatmul.mubr.bf16.gmra.mrb[16].mxu1 %v1678_v35 }
  0x9d   : > { %693 = vmatprep.mubr.bf16.mxu0 %v1679_v36  ;;  %757 = vmatprep.mubr.bf16.mxu1 %v1681_v37 }
  0xa4   : > { %694 = vmatmul.mubr.bf16.gmra.mrb[20].mxu0 %v1683_v38  ;;  %758 = vmatmul.mubr.bf16.gmra.mrb[20].mxu1 %v1684_v39 }
  0xa5   : > { %701 = vmatprep.mubr.bf16.mxu0 %v1685_v40  ;;  %765 = vmatprep.mubr.bf16.mxu1 %v1687_v41 }
  0xac   : > { %702 = vmatmul.mubr.bf16.gmra.mrb[24].mxu0 %v1689_v42  ;;  %766 = vmatmul.mubr.bf16.gmra.mrb[24].mxu1 %v1690_v43 }
  0xad   : > { %709 = vmatprep.mubr.bf16.mxu0 %v1691_v44  ;;  %773 = vmatprep.mubr.bf16.mxu1 %v1693_v45 }
  0xb4   : > { %710 = vmatmul.mubr.bf16.gmra.mrb[28].mxu0 %v1695_v46  ;;  %774 = vmatmul.mubr.bf16.gmra.mrb[28].mxu1 %v1696_v47 }
 0x14f   : > { %v1442_v48 = vpop.f32.mrb[0].mxu0  ;;  %v1490_v49 = vpop.f32.mrb[0].mxu1 }
 0x150   : > { %v1443_v50 = vpop.f32.mrb[1].mxu0  ;;  %v1491_v52 = vpop.f32.mrb[1].mxu1 }
 0x151   : > { %v1444_v53 = vadd.f32 %v1443_v50, %v1442_v48  ;;  %v1492_v54 = vadd.f32 %v1491_v52, %v1490_v49  ;;  %v1445_v55 = vpop.f32.mrb[2].mxu0  ;;  %v1493_v56 = vpop.f32.mrb[2].mxu1 }
 0x152   : > { %v1446_v58 = vpop.f32.mrb[3].mxu0  ;;  %v1494_v59 = vpop.f32.mrb[3].mxu1 }
 0x153   : > { %v789_v60 = vmul.f32 %v1444_v53, %v2077_v51  ;;  %v805_v61 = vmul.f32 %v1492_v54, %v2077_v51  ;;  %v1447_v62 = vadd.f32 %v1446_v58, %v1445_v55  ;;  %v1495_v63 = vadd.f32 %v1494_v59, %v1493_v56 }
 0x155   : > { %v828_v0 = vadd.f32 %v2082_v57, %v789_v60  ;;  %v844_v1 = vadd.f32 %v2082_v57, %v805_v61  ;;  %v790_v2 = vmul.f32 %v1447_v62, %v2077_v51  ;;  %v806_v3 = vmul.f32 %v1495_v63, %v2077_v51 }
 0x157   : > { %v829_v4 = vadd.f32 %v2082_v57, %v790_v2  ;;  %v845_v5 = vadd.f32 %v2082_v57, %v806_v3  ;;  %v1448_v6 = vpop.f32.mrb[4].mxu0  ;;  %v1496_v7 = vpop.f32.mrb[4].mxu1  ;;  %v860_v8 = vmax.f32 %v828_v0, 0.0  ;;  %v876_v9 = vmax.f32 %v844_v1, 0.0 }
 0x158   : > { %v1449_v10 = vpop.f32.mrb[5].mxu0  ;;  %v1497_v11 = vpop.f32.mrb[5].mxu1 }
 0x159   : > { %v861_v12 = vmax.f32 %v829_v4, 0.0  ;;  %v877_v13 = vmax.f32 %v845_v5, 0.0  ;;  %v1450_v14 = vadd.f32 %v1449_v10, %v1448_v6  ;;  %v1498_v15 = vadd.f32 %v1497_v11, %v1496_v7  ;;  %v1451_v16 = vpop.f32.mrb[6].mxu0  ;;  %v1499_v17 = vpop.f32.mrb[6].mxu1 }
 0x15a   : > { %v1452_v18 = vpop.f32.mrb[7].mxu0  ;;  %v1500_v19 = vpop.f32.mrb[7].mxu1 }
 0x15b   : > { %v1334_v20 = vpack.c.bf16 %v861_v12, %v860_v8  ;;  %v1374_v21 = vpack.c.bf16 %v877_v13, %v876_v9  ;;  %v791_v22 = vmul.f32 %v1450_v14, %v2077_v51  ;;  %v807_v23 = vmul.f32 %v1498_v15, %v2077_v51 }
 0x15c   : > { %v1453_v24 = vadd.f32 %v1452_v18, %v1451_v16  ;;  %v1501_v25 = vadd.f32 %v1500_v19, %v1499_v17 }
 0x15d   : > { %1335 = vst [vmem:[%s2095_s22] sm:$0xff] %v1334_v20   ;;  %1418 = vst [vmem:[%s2095_s22 + $0x40] sm:$0xff] %v1374_v21   ;;  %v830_v26 = vadd.f32 %v2082_v57, %v791_v22  ;;  %v846_v27 = vadd.f32 %v2082_v57, %v807_v23 }
 0x15e   : > { %v792_v28 = vmul.f32 %v1453_v24, %v2077_v51  ;;  %v808_v29 = vmul.f32 %v1501_v25, %v2077_v51 }
 0x15f   : > { %v1454_v30 = vpop.f32.mrb[8].mxu0  ;;  %v1502_v31 = vpop.f32.mrb[8].mxu1  ;;  %v862_v40 = vmax.f32 %v830_v26, 0.0  ;;  %v878_v41 = vmax.f32 %v846_v27, 0.0 }
 0x160   : > { %v831_v32 = vadd.f32 %v2082_v57, %v792_v28  ;;  %v847_v33 = vadd.f32 %v2082_v57, %v808_v29  ;;  %v1455_v34 = vpop.f32.mrb[9].mxu0  ;;  %v1503_v35 = vpop.f32.mrb[9].mxu1 }
 0x161   : > { %v1456_v36 = vadd.f32 %v1455_v34, %v1454_v30  ;;  %v1504_v37 = vadd.f32 %v1503_v35, %v1502_v31  ;;  %v1457_v38 = vpop.f32.mrb[10].mxu0  ;;  %v1505_v39 = vpop.f32.mrb[10].mxu1 }
 0x162   : > { %v863_v42 = vmax.f32 %v831_v32, 0.0  ;;  %v879_v43 = vmax.f32 %v847_v33, 0.0  ;;  %v1458_v44 = vpop.f32.mrb[11].mxu0  ;;  %v1506_v45 = vpop.f32.mrb[11].mxu1 }
 0x163   : > { %v793_v46 = vmul.f32 %v1456_v36, %v2077_v51  ;;  %v809_v47 = vmul.f32 %v1504_v37, %v2077_v51  ;;  %v1459_v48 = vadd.f32 %v1458_v44, %v1457_v38  ;;  %v1507_v49 = vadd.f32 %v1506_v45, %v1505_v39 }
 0x164   : > { %v1339_v50 = vpack.c.bf16 %v863_v42, %v862_v40  ;;  %v1379_v52 = vpack.c.bf16 %v879_v43, %v878_v41 }
 0x165   : > { %v832_v53 = vadd.f32 %v2082_v57, %v793_v46  ;;  %v848_v54 = vadd.f32 %v2082_v57, %v809_v47  ;;  %v794_v55 = vmul.f32 %v1459_v48, %v2077_v51  ;;  %v810_v56 = vmul.f32 %v1507_v49, %v2077_v51 }
 0x166   : > { %1411 = vst [vmem:[%s2095_s22 + $0x8] sm:$0xff] %v1339_v50   ;;  %1419 = vst [vmem:[%s2095_s22 + $0x48] sm:$0xff] %v1379_v52  }
 0x167   : > { %v833_v58 = vadd.f32 %v2082_v57, %v794_v55  ;;  %v849_v59 = vadd.f32 %v2082_v57, %v810_v56  ;;  %v1460_v60 = vpop.f32.mrb[12].mxu0  ;;  %v1508_v61 = vpop.f32.mrb[12].mxu1  ;;  %v864_v62 = vmax.f32 %v832_v53, 0.0  ;;  %v880_v63 = vmax.f32 %v848_v54, 0.0 }
 0x168   : > { %v1461_v0 = vpop.f32.mrb[13].mxu0  ;;  %v1509_v1 = vpop.f32.mrb[13].mxu1 }
 0x169   : > { %v865_v2 = vmax.f32 %v833_v58, 0.0  ;;  %v881_v3 = vmax.f32 %v849_v59, 0.0  ;;  %v1462_v4 = vadd.f32 %v1461_v0, %v1460_v60  ;;  %v1510_v5 = vadd.f32 %v1509_v1, %v1508_v61  ;;  %v1463_v6 = vpop.f32.mrb[14].mxu0  ;;  %v1511_v7 = vpop.f32.mrb[14].mxu1 }
 0x16a   : > { %v1464_v8 = vpop.f32.mrb[15].mxu0  ;;  %v1512_v9 = vpop.f32.mrb[15].mxu1 }
 0x16b   : > { %v1344_v10 = vpack.c.bf16 %v865_v2, %v864_v62  ;;  %v1384_v11 = vpack.c.bf16 %v881_v3, %v880_v63  ;;  %v795_v12 = vmul.f32 %v1462_v4, %v2077_v51  ;;  %v811_v13 = vmul.f32 %v1510_v5, %v2077_v51 }
 0x16c   : > { %v1465_v14 = vadd.f32 %v1464_v8, %v1463_v6  ;;  %v1513_v15 = vadd.f32 %v1512_v9, %v1511_v7 }
 0x16d   : > { %1412 = vst [vmem:[%s2095_s22 + $0x10] sm:$0xff] %v1344_v10   ;;  %1420 = vst [vmem:[%s2095_s22 + $0x50] sm:$0xff] %v1384_v11   ;;  %v834_v16 = vadd.f32 %v2082_v57, %v795_v12  ;;  %v850_v17 = vadd.f32 %v2082_v57, %v811_v13 }
 0x16e   : > { %v796_v18 = vmul.f32 %v1465_v14, %v2077_v51  ;;  %v812_v19 = vmul.f32 %v1513_v15, %v2077_v51 }
 0x16f   : > { %v1466_v20 = vpop.f32.mrb[16].mxu0  ;;  %v1514_v21 = vpop.f32.mrb[16].mxu1  ;;  %v866_v30 = vmax.f32 %v834_v16, 0.0  ;;  %v882_v31 = vmax.f32 %v850_v17, 0.0 }
 0x170   : > { %v835_v22 = vadd.f32 %v2082_v57, %v796_v18  ;;  %v851_v23 = vadd.f32 %v2082_v57, %v812_v19  ;;  %v1467_v24 = vpop.f32.mrb[17].mxu0  ;;  %v1515_v25 = vpop.f32.mrb[17].mxu1 }
 0x171   : > { %v1468_v26 = vadd.f32 %v1467_v24, %v1466_v20  ;;  %v1516_v27 = vadd.f32 %v1515_v25, %v1514_v21  ;;  %v1469_v28 = vpop.f32.mrb[18].mxu0  ;;  %v1517_v29 = vpop.f32.mrb[18].mxu1 }
 0x172   : > { %v867_v32 = vmax.f32 %v835_v22, 0.0  ;;  %v883_v33 = vmax.f32 %v851_v23, 0.0  ;;  %v1470_v34 = vpop.f32.mrb[19].mxu0  ;;  %v1518_v35 = vpop.f32.mrb[19].mxu1 }
 0x173   : > { %v797_v36 = vmul.f32 %v1468_v26, %v2077_v51  ;;  %v813_v37 = vmul.f32 %v1516_v27, %v2077_v51  ;;  %v1471_v38 = vadd.f32 %v1470_v34, %v1469_v28  ;;  %v1519_v39 = vadd.f32 %v1518_v35, %v1517_v29 }
 0x174   : > { %v1349_v40 = vpack.c.bf16 %v867_v32, %v866_v30  ;;  %v1389_v41 = vpack.c.bf16 %v883_v33, %v882_v31 }
 0x175   : > { %v836_v42 = vadd.f32 %v2082_v57, %v797_v36  ;;  %v852_v43 = vadd.f32 %v2082_v57, %v813_v37  ;;  %v798_v44 = vmul.f32 %v1471_v38, %v2077_v51  ;;  %v814_v45 = vmul.f32 %v1519_v39, %v2077_v51 }
 0x176   : > { %1413 = vst [vmem:[%s2095_s22 + $0x18] sm:$0xff] %v1349_v40   ;;  %1421 = vst [vmem:[%s2095_s22 + $0x58] sm:$0xff] %v1389_v41  }
 0x177   : > { %v837_v46 = vadd.f32 %v2082_v57, %v798_v44  ;;  %v853_v47 = vadd.f32 %v2082_v57, %v814_v45  ;;  %v1472_v48 = vpop.f32.mrb[20].mxu0  ;;  %v1520_v49 = vpop.f32.mrb[20].mxu1  ;;  %v868_v50 = vmax.f32 %v836_v42, 0.0  ;;  %v884_v52 = vmax.f32 %v852_v43, 0.0 }
 0x178   : > { %v1473_v53 = vpop.f32.mrb[21].mxu0  ;;  %v1521_v54 = vpop.f32.mrb[21].mxu1 }
 0x179   : > { %v869_v55 = vmax.f32 %v837_v46, 0.0  ;;  %v885_v56 = vmax.f32 %v853_v47, 0.0  ;;  %v1474_v58 = vadd.f32 %v1473_v53, %v1472_v48  ;;  %v1522_v59 = vadd.f32 %v1521_v54, %v1520_v49  ;;  %v1475_v60 = vpop.f32.mrb[22].mxu0  ;;  %v1523_v61 = vpop.f32.mrb[22].mxu1 }
 0x17a   : > { %v1476_v62 = vpop.f32.mrb[23].mxu0  ;;  %v1524_v63 = vpop.f32.mrb[23].mxu1 }
 0x17b   : > { %v1354_v0 = vpack.c.bf16 %v869_v55, %v868_v50  ;;  %v1394_v1 = vpack.c.bf16 %v885_v56, %v884_v52  ;;  %v799_v2 = vmul.f32 %v1474_v58, %v2077_v51  ;;  %v815_v3 = vmul.f32 %v1522_v59, %v2077_v51 }
 0x17c   : > { %v1477_v4 = vadd.f32 %v1476_v62, %v1475_v60  ;;  %v1525_v5 = vadd.f32 %v1524_v63, %v1523_v61 }
 0x17d   : > { %1414 = vst [vmem:[%s2095_s22 + $0x20] sm:$0xff] %v1354_v0   ;;  %1422 = vst [vmem:[%s2095_s22 + $0x60] sm:$0xff] %v1394_v1   ;;  %v838_v6 = vadd.f32 %v2082_v57, %v799_v2  ;;  %v854_v7 = vadd.f32 %v2082_v57, %v815_v3 }
 0x17e   : > { %v800_v8 = vmul.f32 %v1477_v4, %v2077_v51  ;;  %v816_v9 = vmul.f32 %v1525_v5, %v2077_v51 }
 0x17f   : > { %v1478_v10 = vpop.f32.mrb[24].mxu0  ;;  %v1526_v11 = vpop.f32.mrb[24].mxu1  ;;  %v870_v20 = vmax.f32 %v838_v6, 0.0  ;;  %v886_v21 = vmax.f32 %v854_v7, 0.0 }
 0x180   : > { %v839_v12 = vadd.f32 %v2082_v57, %v800_v8  ;;  %v855_v13 = vadd.f32 %v2082_v57, %v816_v9  ;;  %v1479_v14 = vpop.f32.mrb[25].mxu0  ;;  %v1527_v15 = vpop.f32.mrb[25].mxu1 }
 0x181   : > { %v1480_v16 = vadd.f32 %v1479_v14, %v1478_v10  ;;  %v1528_v17 = vadd.f32 %v1527_v15, %v1526_v11  ;;  %v1481_v18 = vpop.f32.mrb[26].mxu0  ;;  %v1529_v19 = vpop.f32.mrb[26].mxu1 }
 0x182   : > { %v871_v22 = vmax.f32 %v839_v12, 0.0  ;;  %v887_v23 = vmax.f32 %v855_v13, 0.0  ;;  %v1482_v24 = vpop.f32.mrb[27].mxu0  ;;  %v1530_v25 = vpop.f32.mrb[27].mxu1 }
 0x183   : > { %v801_v26 = vmul.f32 %v1480_v16, %v2077_v51  ;;  %v817_v27 = vmul.f32 %v1528_v17, %v2077_v51  ;;  %v1483_v28 = vadd.f32 %v1482_v24, %v1481_v18  ;;  %v1531_v29 = vadd.f32 %v1530_v25, %v1529_v19 }
 0x184   : > { %v1359_v30 = vpack.c.bf16 %v871_v22, %v870_v20  ;;  %v1399_v31 = vpack.c.bf16 %v887_v23, %v886_v21 }
 0x185   : > { %v840_v32 = vadd.f32 %v2082_v57, %v801_v26  ;;  %v856_v33 = vadd.f32 %v2082_v57, %v817_v27  ;;  %v802_v34 = vmul.f32 %v1483_v28, %v2077_v51  ;;  %v818_v35 = vmul.f32 %v1531_v29, %v2077_v51 }
 0x186   : > { %1415 = vst [vmem:[%s2095_s22 + $0x28] sm:$0xff] %v1359_v30   ;;  %1423 = vst [vmem:[%s2095_s22 + $0x68] sm:$0xff] %v1399_v31  }
 0x187   : > { %v841_v36 = vadd.f32 %v2082_v57, %v802_v34  ;;  %v857_v37 = vadd.f32 %v2082_v57, %v818_v35  ;;  %v1484_v38 = vpop.f32.mrb[28].mxu0  ;;  %v1532_v39 = vpop.f32.mrb[28].mxu1  ;;  %v872_v40 = vmax.f32 %v840_v32, 0.0  ;;  %v888_v41 = vmax.f32 %v856_v33, 0.0 }
 0x188   : > { %v1485_v42 = vpop.f32.mrb[29].mxu0  ;;  %v1533_v43 = vpop.f32.mrb[29].mxu1 }
 0x189   : > { %v873_v44 = vmax.f32 %v841_v36, 0.0  ;;  %v889_v45 = vmax.f32 %v857_v37, 0.0  ;;  %v1486_v46 = vadd.f32 %v1485_v42, %v1484_v38  ;;  %v1534_v47 = vadd.f32 %v1533_v43, %v1532_v39  ;;  %v1487_v48 = vpop.f32.mrb[30].mxu0  ;;  %v1535_v49 = vpop.f32.mrb[30].mxu1 }
 0x18a   : > { %v1488_v50 = vpop.f32.mrb[31].mxu0  ;;  %v1536_v52 = vpop.f32.mrb[31].mxu1 }
 0x18b   : > { %v1364_v53 = vpack.c.bf16 %v873_v44, %v872_v40  ;;  %v1404_v54 = vpack.c.bf16 %v889_v45, %v888_v41  ;;  %v803_v55 = vmul.f32 %v1486_v46, %v2077_v51  ;;  %v819_v56 = vmul.f32 %v1534_v47, %v2077_v51 }
 0x18c   : > { %v1489_v58 = vadd.f32 %v1488_v50, %v1487_v48  ;;  %v1537_v59 = vadd.f32 %v1536_v52, %v1535_v49 }
 0x18d   : > { %1416 = vst [vmem:[%s2095_s22 + $0x30] sm:$0xff] %v1364_v53   ;;  %1424 = vst [vmem:[%s2095_s22 + $0x70] sm:$0xff] %v1404_v54   ;;  %v842_v60 = vadd.f32 %v2082_v57, %v803_v55  ;;  %v858_v61 = vadd.f32 %v2082_v57, %v819_v56 }
 0x18e   : > { %v804_v62 = vmul.f32 %v1489_v58, %v2077_v51  ;;  %v820_v63 = vmul.f32 %v1537_v59, %v2077_v51 }
 0x18f   : > { %v874_v2 = vmax.f32 %v842_v60, 0.0  ;;  %v890_v3 = vmax.f32 %v858_v61, 0.0 }
 0x190   : > { %v843_v0 = vadd.f32 %v2082_v57, %v804_v62  ;;  %v859_v1 = vadd.f32 %v2082_v57, %v820_v63 }
 0x192   : > { %v875_v4 = vmax.f32 %v843_v0, 0.0  ;;  %v891_v5 = vmax.f32 %v859_v1, 0.0 }
 0x194   : > { %v1369_v51 = vpack.c.bf16 %v875_v4, %v874_v2  ;;  %v1409_v6 = vpack.c.bf16 %v891_v5, %v890_v3 }
 0x196   : > { %1417 = vst [vmem:[%s2095_s22 + $0x38] sm:$0xff] %v1369_v51   ;;  %1425 = vst [vmem:[%s2095_s22 + $0x78] sm:$0xff] %v1409_v6  }
 0x197   : > { %1768 = shalt.err (!%p1765_p5)
}
 0x198   : > { %s1769_s23 = scalar_lea.hbm %s2170_s6, 2048  ;;  %s1773_s14 = scalar_lea.hbm %s2226_s4, 16384 }
 0x199   : > { %p1770_p9 = scmp.ne.s32.totalorder %s2170_s6, %s1769_s23  ;;  %p1774_p3 = scmp.lt.u32.totalorder %s2170_s6, %s2226_s4 }
 0x19a   : > { %p1775_p7 = scmp.lt.u32.totalorder %s1773_s14, %s1769_s23  ;;  %p1777_p4 = scmp.lt.u32.totalorder %s1769_s23, %s2170_s6 }
 0x19b   : > { %p1771_p1 = pnand %p1770_p9, %p1972_p11 }
 0x19c   : > { %p1776_p13 = por %p1775_p7, %p1774_p3 }
 0x19d   : > { %p1772_p2 = pneg %p1771_p1 }
 0x19e   : > { %p1778_p6 = por %p1777_p4, %p1776_p13 }
 0x1a0   : > { %p1779_p8 = pnand %p1778_p6, %p1772_p2 }
 0x1a2   : > { %1782 = shalt.err (!%p1779_p8)
}
 0x1a3   : > { %s1850_s28 = smov 64   ;;  %s1851_s24 = smov 4  }
 0x1a4   : > { %1560 = dma.vmem_to_hbm [thread:$0]  (%p1972_p11), %s2172_s13, 2048, %s2170_s6, %s1053_s18, %s1850_s28, %s1850_s28, %s1851_s24  }
 0x1a5 PF: > { %p1577_p12 = scmp.ge.s32.totalorder %s1841_s20, 2  ;;  %s1082_s30 = sand.u32 1, %s1821_s15  }
 0x1a6   : > { %p2244_p10 = scmp.ne.s32.totalorder %s2234_s26, 0  ;;  %s1083_s9 = scalar_lea.sflag [#allocation4], %s1082_s30 }
 0x1a8   : > { %p1571_p0 = pnand %p1577_p12, %p2244_p10 }
 0x1aa   : > { %1816 = dma.done.wait (!%p1571_p0), %s1083_s9, 2048  }
 0x1ab   : > { %1818 = vsyncadd (!%p1571_p0), %s1083_s9, 4294965248  ;;  %s21_s20 = sadd.s32 1, %s1841_s20   ;;  %s2245_s15 = smov %s1825_s16 }
 0x1ac   : > { %p18_p5 = scmp.ge.s32.totalorder %s21_s20, 10   ;;  %s2246_s16 = smov %s1829_s17 }
 0x1ad   : > { %s2247_s17 = smov %s1981_s10  ;;  %s2248_s18 = smov %s1837_s19 }
 0x1ae   : > { %s2249_s19 = smov %s2251_s5  ;;  %20 = sbr.rel (!%p18_p5) target bundleno = 7 (0x7), region = 92 }
 0x1b5   :  { %1088 = vsyncpa [#allocation3], 1 }
 0x1b6   :  { %1090 = vsyncpa [#allocation3 + $0x1], 1 }
 0x1b7   :  { %1091 = vsyncpa [#allocation6], 1 }
 0x1b8   :  { %1092 = vsyncpa [#allocation4], 1 }
 0x1b9   :  { %1094 = vsyncpa [#allocation4 + $0x1], 1 }

</bundles_post_ra>
